<compile_context>
chip_gen: v7x
topology: tpu7x:2x2x1
jax: 0.10.0
libtpu: 0.0.40
codegen_flags: <defaults>
</compile_context>

<pallas_src>
import jax
import jax.numpy as jnp
import numpy as np
from jax import lax
from jax.experimental import pallas as pl
from jax.experimental.pallas import tpu as pltpu


def _round_up(x: int, m: int) -> int:
    return ((x + m - 1) // m) * m


# -----------------------------------------------------------------------------
# Kernel 1: triple scoring  (tails is not None branch)
#   score[b] = || q[b] - t[b] ||_2^2,   q = h + r
# -----------------------------------------------------------------------------
def _transe_triple_kernel(q_ref, t_ref, out_ref):
    diff = q_ref[...] - t_ref[...]                             # (TB, D)
    # Last-dim-1 output => masked store, but inputs dominate bytes here.
    out_ref[...] = jnp.sum(diff * diff, axis=-1, keepdims=True)  # (TB, 1)


def transe_score_triples(h_emb, r_emb, t_emb, *, tile_b=256):
    B, D = h_emb.shape
    q = (h_emb + r_emb).astype(jnp.float32)
    t = t_emb.astype(jnp.float32)

    D_pad = _round_up(D, 128)
    tile_b = min(tile_b, _round_up(B, 8))
    B_pad = _round_up(B, tile_b)

    q = jnp.pad(q, ((0, B_pad - B), (0, D_pad - D)))
    t = jnp.pad(t, ((0, B_pad - B), (0, D_pad - D)))

    out = pl.pallas_call(
        _transe_triple_kernel,
        out_shape=jax.ShapeDtypeStruct((B_pad, 1), jnp.float32),
        grid=(B_pad // tile_b,),
        in_specs=[
            pl.BlockSpec((tile_b, D_pad), lambda b: (b, 0)),
            pl.BlockSpec((tile_b, D_pad), lambda b: (b, 0)),
        ],
        out_specs=pl.BlockSpec((tile_b, 1), lambda b: (b, 0)),
        compiler_params=pltpu.CompilerParams(
            dimension_semantics=("parallel",)),
    )(q, t)
    return out[:B, 0]                                          # (B,)


# -----------------------------------------------------------------------------
# Kernel 2: 1-vs-all scoring  (tails is None branch)
#   score[b, n] = || q[b] - E[n] ||^2 = ||q[b]||^2 + ||E[n]||^2 - 2 q[b].E[n]
# The q.E^T term runs on the MXU; the per-tile ||E||^2 row vector is a cheap
# XLU reduce; the live intermediate is only (TB, TN).
# -----------------------------------------------------------------------------
def _transe_all_kernel(q_ref, qsq_ref, ent_ref, out_ref):
    q = q_ref[...]                                             # (TB, D)
    ent = ent_ref[...]                                         # (TN, D)
    ent_sq = jnp.sum(ent * ent, axis=-1)[None, :]              # (1, TN)
    s = lax.dot_general(                                       # (TB, TN) on MXU
        q, ent,
        dimension_numbers=(((1,), (1,)), ((), ())),
        preferred_element_type=jnp.float32,
        precision=lax.Precision.HIGHEST,
    )
    out_ref[...] = qsq_ref[...] + ent_sq - 2.0 * s             # (TB, TN)


def transe_score_all(h_emb, r_emb, ent_weight, *, tile_n=512, tile_b=128):
    B, D = h_emb.shape
    N, _ = ent_weight.shape

    # Precompute q = h + r and ||q||^2 exactly once (not per grid step).
    q = (h_emb + r_emb).astype(jnp.float32)

    D_pad = _round_up(D, 128)
    tile_b = min(tile_b, _round_up(B, 8))
    B_pad = _round_up(B, tile_b)
    tile_n = min(tile_n, _round_up(N, 128))
    N_pad = _round_up(N, tile_n)

    q = jnp.pad(q, ((0, B_pad - B), (0, D_pad - D)))
    qsq = jnp.sum(q * q, axis=-1, keepdims=True)               # (B_pad, 1)
    ent = jnp.pad(ent_weight.astype(jnp.float32),
                  ((0, N_pad - N), (0, D_pad - D)))

    # VMEM/step (f32): ent 2*tile_n*D_pad*4 + out 2*tile_b*tile_n*4 + q 2*tile_b*D_pad*4.
    # Fits default scoped limits for these tiles; raise vmem_limit_bytes via
    # pltpu.CompilerParams if tile_n/D grow large (leave headroom on v7x, 64 MiB).
    out = pl.pallas_call(
        _transe_all_kernel,
        out_shape=jax.ShapeDtypeStruct((B_pad, N_pad), jnp.float32),
        grid=(B_pad // tile_b, N_pad // tile_n),
        in_specs=[
            pl.BlockSpec((tile_b, D_pad), lambda b, n: (b, 0)),
            pl.BlockSpec((tile_b, 1), lambda b, n: (b, 0)),
            pl.BlockSpec((tile_n, D_pad), lambda b, n: (n, 0)),
        ],
        out_specs=pl.BlockSpec((tile_b, tile_n), lambda b, n: (b, n)),
        compiler_params=pltpu.CompilerParams(
            dimension_semantics=("parallel", "parallel")),
    )(q, qsq, ent)
    return out[:B, :N]                                         # (B, N)


# -----------------------------------------------------------------------------
# TransE module (parameters + forward), mirroring the PyTorch semantics.
# -----------------------------------------------------------------------------
def xavier_uniform(key, shape):
    # torch xavier_uniform_ on a 2D weight: fan_in = cols, fan_out = rows.
    bound = float(np.sqrt(6.0 / (shape[0] + shape[1])))
    return jax.random.uniform(key, shape, jnp.float32, -bound, bound)


class TransE:
    def __init__(self, num_entities, num_relations, emb_dim, key):
        k1, k2 = jax.random.split(key)
        self.emb_dim = emb_dim
        self.ent_embeddings = xavier_uniform(k1, (num_entities, emb_dim))
        self.rel_embeddings = xavier_uniform(k2, (num_relations, emb_dim))

    def forward(self, heads, relations, tails):
        h_emb = jnp.take(self.ent_embeddings, heads, axis=0)       # (B, D)
        r_emb = jnp.take(self.rel_embeddings, relations, axis=0)   # (B, D)
        if tails is None:
            # score[b, n] = || h[b] + r[b] - E[n] ||^2  -> (B, num_entities)
            return transe_score_all(h_emb, r_emb, self.ent_embeddings)
        else:
            t_emb = jnp.take(self.ent_embeddings, tails, axis=0)   # (B, D)
            # score[b] = || h[b] + r[b] - t[b] ||^2  -> (B,)
            return transe_score_triples(h_emb, r_emb, t_emb)

    # TODO(synk): train_step (optimizer + margin-ranking loss + backward) is a
    # training-loop concern and is not translated to Pallas here.


if __name__ == "__main__":
    # Small, deterministic problem sizes (non-multiple entity count exercises
    # the padding path).
    num_entities = 300
    num_relations = 16
    emb_dim = 128
    batch = 8

    key = jax.random.PRNGKey(0)
    k_params, k_h, k_r, k_t = jax.random.split(key, 4)

    model = TransE(num_entities, num_relations, emb_dim, k_params)

    heads = jax.random.randint(k_h, (batch,), 0, num_entities, dtype=jnp.int32)
    relations = jax.random.randint(k_r, (batch,), 0, num_relations, dtype=jnp.int32)
    tails = jax.random.randint(k_t, (batch,), 0, num_entities, dtype=jnp.int32)

    # Branch 1: triple scores.
    triple_scores = jax.block_until_ready(model.forward(heads, relations, tails))

    # Branch 2: 1-vs-all scores (tails=None).
    all_scores = jax.block_until_ready(model.forward(heads, relations, None))

    # Pure-JAX reference check.
    h = model.ent_embeddings[heads]
    r = model.rel_embeddings[relations]
    t = model.ent_embeddings[tails]
    ref_triple = jnp.sum((h + r - t) ** 2, axis=-1)
    ref_all = jnp.sum(
        (h[:, None, :] + r[:, None, :] - model.ent_embeddings[None]) ** 2, axis=-1)

    assert triple_scores.shape == (batch,)
    assert all_scores.shape == (batch, num_entities)
    np.testing.assert_allclose(np.asarray(triple_scores), np.asarray(ref_triple),
                               rtol=1e-4, atol=1e-4)
    np.testing.assert_allclose(np.asarray(all_scores), np.asarray(ref_all),
                               rtol=1e-4, atol=1e-4)

    print("KERNEL_OK")
</pallas_src>

<mosaic_0001>
module attributes {stable_mosaic.version = 11 : i64} {
  func.func @_transe_triple_kernel(%arg0: i32, %arg1: memref<8x128xf32, #tpu.memory_space<vmem>>, %arg2: memref<8x128xf32, #tpu.memory_space<vmem>>, %arg3: memref<8x1xf32, #tpu.memory_space<vmem>>) attributes {dimension_semantics = [#tpu.dimension_semantics<parallel>], iteration_bounds = array<i64: 1>, scalar_prefetch = 0 : i64, scratch_operands = 0 : i64, tpu.core_type = #tpu.core_type<tc>, window_params = [{transform_indices = @transform_0, window_bounds = array<i64: 8, 128>}, {transform_indices = @transform_1, window_bounds = array<i64: 8, 128>}, {transform_indices = @transform_2, window_bounds = array<i64: 8, 1>}]} {
    %c0 = arith.constant 0 : index
    %c0_0 = arith.constant 0 : index
    %0 = vector.load %arg1[%c0, %c0_0] : memref<8x128xf32, #tpu.memory_space<vmem>>, vector<8x128xf32>
    %c0_1 = arith.constant 0 : index
    %c0_2 = arith.constant 0 : index
    %1 = vector.load %arg2[%c0_1, %c0_2] : memref<8x128xf32, #tpu.memory_space<vmem>>, vector<8x128xf32>
    %2 = arith.subf %0, %1 : vector<8x128xf32>
    %3 = arith.mulf %2, %2 : vector<8x128xf32>
    %cst = arith.constant dense<0.000000e+00> : vector<8xf32>
    %4 = vector.multi_reduction <add>, %3, %cst [1] : vector<8x128xf32> to vector<8xf32>
    %5 = vector.shape_cast %4 : vector<8xf32> to vector<8x1xf32>
    %c0_3 = arith.constant 0 : index
    %c0_4 = arith.constant 0 : index
    %6 = vector.load %arg3[%c0_3, %c0_4] : memref<8x1xf32, #tpu.memory_space<vmem>>, vector<8x1xf32>
    tpu.vector_store %arg3[%c0_3, %c0_4], %5 {strides = array<i32>} : memref<8x1xf32, #tpu.memory_space<vmem>>, vector<8x1xf32>,
    return
  }
  func.func @transform_0(%arg0: i32) -> (i32, i32) {
    %c0_i32 = arith.constant 0 : i32
    %c0_i32_0 = arith.constant 0 : i32
    return %arg0, %c0_i32 : i32, i32
  }
  func.func @transform_1(%arg0: i32) -> (i32, i32) {
    %c0_i32 = arith.constant 0 : i32
    %c0_i32_0 = arith.constant 0 : i32
    return %arg0, %c0_i32 : i32, i32
  }
  func.func @transform_2(%arg0: i32) -> (i32, i32) {
    %c0_i32 = arith.constant 0 : i32
    %c0_i32_0 = arith.constant 0 : i32
    return %arg0, %c0_i32 : i32, i32
  }
}

</mosaic_0001>

<bundles_post_ra>
// kernel: tpu_custom_call.1
= control target key start
LH: loop header
LB: loop body
LE: loop exit
PB: predicated region body
PF: predicated region fallthrough
CT: control target
= control target key end

     0   :  { %7 = vsyncpa [#allocation3], 0  ;;  %s143_s0 = inlined_call_operand.hbm [shape: f32[8,128], index: 0, kind: input, shape index: {}]   ;;  %s144_s1 = inlined_call_operand.hbm [shape: f32[8,128], index: 1, kind: input, shape index: {}]   ;;  %s145_s2 = inlined_call_operand.vmem [shape: f32[8,1], index: 2, kind: output, shape index: {}]  }
   0x1   :  { %8 = vsyncpa [#allocation5], 0  ;;  %s99_s9 = smov [#allocation2]   ;;  %s100_s11 = smov [#allocation4]  }
   0x2   :  { %s15_s10 = sshll.u32 %s99_s9, 4  ;;  %s25_s12 = sshll.u32 %s100_s11, 4  ;;  %s16_s10 = int_to_ptr.vmem [resolvable:$true] %s15_s10  ;;  %s26_s12 = int_to_ptr.vmem [resolvable:$true] %s25_s12 }
   0x3   :  { %s51_s15 = scalar_lea.hbm %s143_s0, 128 }
   0x4   :  { %p52_p0 = scmp.ne.s32.totalorder %s143_s0, %s51_s15  ;;  %p55_p1 = scmp.lt.u32.totalorder %s51_s15, %s143_s0 }
   0x6   :  { %p57_p2 = pnand %p55_p1, %p52_p0 }
   0x8   :  { %60 = shalt.err (!%p57_p2)
}
   0x9   :  { %s61_s20 = scalar_lea.vmem %s16_s10, 128  ;;  %p66_p4 = scmp.lt.s32.totalorder %s16_s10, %s16_s10 }
   0xa   :  { %p62_p3 = scmp.ne.s32.totalorder %s16_s10, %s61_s20  ;;  %p67_p5 = scmp.lt.s32.totalorder %s61_s20, %s61_s20 }
   0xc   :  { %p68_p6 = por %p67_p5, %p66_p4 }
   0xe   :  { %p69_p7 = pnand %p68_p6, %p62_p3 }
  0x10   :  { %72 = shalt.err (!%p69_p7)
}
  0x11   :  { %18 = dma.hbm_to_vmem [thread:$0]  %s143_s0, 128, %s16_s10, [#allocation3]  }
  0x12   :  { %s73_s25 = scalar_lea.hbm %s144_s1, 128 }
  0x13   :  { %p74_p8 = scmp.ne.s32.totalorder %s144_s1, %s73_s25  ;;  %p77_p9 = scmp.lt.u32.totalorder %s73_s25, %s144_s1 }
  0x15   :  { %p79_p10 = pnand %p77_p9, %p74_p8 }
  0x17   :  { %82 = shalt.err (!%p79_p10)
}
  0x18   :  { %s83_s30 = scalar_lea.vmem %s26_s12, 128  ;;  %p88_p12 = scmp.lt.s32.totalorder %s26_s12, %s26_s12 }
  0x19   :  { %p84_p11 = scmp.ne.s32.totalorder %s26_s12, %s83_s30  ;;  %p89_p13 = scmp.lt.s32.totalorder %s83_s30, %s83_s30 }
  0x1b   :  { %p90_p0 = por %p89_p13, %p88_p12 }
  0x1d   :  { %p91_p1 = pnand %p90_p0, %p84_p11 }
  0x1f   :  { %94 = shalt.err (!%p91_p1)
}
  0x20   :  { %28 = dma.hbm_to_vmem [thread:$0]  %s144_s1, 128, %s26_s12, [#allocation5]  }
  0x21   :  { %95 = dma.done.wait [#allocation3], 128  }
  0x22   :  { %96 = vsyncadd [#allocation3], 4294967168 }
  0x23   :  { %97 = dma.done.wait [#allocation5], 128  }
  0x24   :  { %98 = vsyncadd [#allocation5], 4294967168  ;;  %v35_v0 = vld [vmem:[#allocation2] sm:$0xff]  ;;  %v36_v1 = vld [vmem:[#allocation4] sm:$0xff]  ;;  %vm41_vm0 = vcmask 7168  }
  0x25   :  { %v37_v2 = vsub.f32 %v35_v0, %v36_v1 }
  0x27   :  { %v38_v3 = vmul.f32 %v37_v2, %v37_v2 }
  0x29   :  { %39 = vadd.xlane.f32.xlu0 %v38_v3 }
  0xb6   :  { %v40_v4 = vpop.xlane.xlu0 %39 }
  0xb7   :  { %42 = vst.msk [vmem:[%s145_s2] sm:$0xff] %vm41_vm0, %v40_v4 }
  0xb8   :  { %47 = vsyncpa [#allocation3], 1 }
  0xb9   :  { %48 = vsyncpa [#allocation5], 1 }

</bundles_post_ra>
